<compile_context>
chip_gen: v6e
topology: v6e:2x2x1
jax: 0.10.0
libtpu: 0.0.40
codegen_flags: <defaults>
</compile_context>

<pallas_src>
import jax
import jax.numpy as jnp
from jax.experimental import pallas as pl
from jax.experimental.pallas import tpu as pltpu


N_INFLIGHT = 4  # DMA copies in flight per TensorCore (review: K ~ 4-8)


def make_prompt_kernel(n_prompts: int, prefix_len: int, n_ctx: int,
                       suffix_len: int, p_per_step: int,
                       n_inflight: int = N_INFLIGHT):
    """Kernel: assemble the shared prompt template, then DMA it to every
    prompt slab of the HBM output owned by this grid step."""
    seq = prefix_len + n_ctx + suffix_len

    def kernel(prefix_ref, ctx_ref, suffix_ref, out_hbm, tmpl_ref, sems):
        # prefix_ref : (prefix_len, ctx_dim)  VMEM, resident (constant index map)
        # ctx_ref    : (n_ctx, ctx_dim)       VMEM, resident
        # suffix_ref : (suffix_len, ctx_dim)  VMEM, resident
        # out_hbm    : (n_prompts, seq, ctx_dim) raw HBM ref (memory_space=ANY)
        # tmpl_ref   : (seq, ctx_dim)         VMEM scratch (shared template)
        # sems       : (n_inflight,)          DMA semaphores
        #
        # ---- assemble [prefix | ctx | suffix] template (tiny, per step) -----
        # NOT gated on program_id == 0: each TensorCore must build its own copy
        # under dimension_semantics=("parallel",).
        tmpl_ref[0:prefix_len, :] = prefix_ref[...]
        tmpl_ref[prefix_len:prefix_len + n_ctx, :] = ctx_ref[...]
        tmpl_ref[prefix_len + n_ctx:seq, :] = suffix_ref[...]

        # ---- DMA fan-out: template -> out_hbm[p] for this step's prompts ----
        step = pl.program_id(0)
        base = step * p_per_step
        # Clip the (possibly ragged) last step: with manual DMA we are
        # responsible for never writing past n_prompts.
        count = jnp.minimum(p_per_step, n_prompts - base)

        def start_copy(p, slot):
            pltpu.make_async_copy(tmpl_ref, out_hbm.at[p], sems.at[slot]).start()

        def wait_slot(slot):
            # Every copy has the identical (seq, ctx_dim) size, so the wait
            # descriptor's destination index is irrelevant.
            pltpu.make_async_copy(tmpl_ref, out_hbm.at[0], sems.at[slot]).wait()

        @pl.loop(0, count)
        def _(i):
            slot = i % n_inflight

            @pl.when(i >= n_inflight)
            def _():
                wait_slot(slot)          # retire copy (i - n_inflight) on this slot

            start_copy(base + i, slot)

        # Drain: the last min(count, n_inflight) copies, one per used slot.
        @pl.loop(0, jnp.minimum(count, n_inflight))
        def _(slot):
            wait_slot(slot)

    return kernel


def prompt_learner_forward(token_prefix, ctx, token_suffix, n_prompts: int,
                           out_dtype=None):
    """
    token_prefix : (1, prefix_len, ctx_dim)   frozen CLIP SOS embedding
    ctx          : (n_ctx, ctx_dim)           learnable context vectors
    token_suffix : (1, suffix_len, ctx_dim)   frozen class/EOS token embeddings
    returns      : (n_prompts, prefix_len + n_ctx + suffix_len, ctx_dim)

    prefix/suffix are broadcast across n_prompts (single-text CoOp semantics,
    matching the original module which registers one prompt's buffers).
    # TODO(synk): per-class prefix/suffix (n_cls > 1) would need a leading
    # n_prompts dim on the buffers and per-prompt DMA source slices.
    """
    prefix_len = token_prefix.shape[1]
    suffix_len = token_suffix.shape[1]
    n_ctx, ctx_dim = ctx.shape
    seq = prefix_len + n_ctx + suffix_len

    # bf16 output halves HBM write bytes (the only roofline for this op) when
    # the downstream text encoder runs in bf16; default keeps the param dtype.
    out_dtype = jnp.dtype(out_dtype) if out_dtype is not None else ctx.dtype
    prefix2d = token_prefix.reshape(prefix_len, ctx_dim).astype(out_dtype)
    ctx2d = ctx.astype(out_dtype)
    suffix2d = token_suffix.reshape(suffix_len, ctx_dim).astype(out_dtype)

    # One grid step per TensorCore: 2 steps so v7x megacore splits the prompt
    # range evenly; on single-core v5e/v6e the 2nd step is ~0.35 us overhead.
    num_steps = min(2, n_prompts)
    p_per_step = pl.cdiv(n_prompts, num_steps)

    kernel = make_prompt_kernel(n_prompts, prefix_len, n_ctx, suffix_len,
                                p_per_step)

    return pl.pallas_call(
        kernel,
        out_shape=jax.ShapeDtypeStruct((n_prompts, seq, ctx_dim), out_dtype),
        grid_spec=pltpu.PrefetchScalarGridSpec(
            num_scalar_prefetch=0,
            grid=(num_steps,),
            in_specs=[
                # Constant index maps: DMA'd into VMEM once, kept resident.
                pl.BlockSpec((prefix_len, ctx_dim), lambda s: (0, 0)),
                pl.BlockSpec((n_ctx, ctx_dim), lambda s: (0, 0)),
                pl.BlockSpec((suffix_len, ctx_dim), lambda s: (0, 0)),
            ],
            # Raw HBM output: the kernel DMAs the template straight to HBM, so
            # there is no double-buffered output block in VMEM at all.
            out_specs=pl.BlockSpec(memory_space=pl.ANY),
            scratch_shapes=[
                pltpu.VMEM((seq, ctx_dim), out_dtype),      # template
                pltpu.SemaphoreType.DMA((N_INFLIGHT,)),     # copy slots
            ],
        ),
        compiler_params=pltpu.CompilerParams(
            # Prompt axis is embarrassingly parallel -> v7x megacore splits it.
            dimension_semantics=("parallel",),
        ),
    )(prefix2d, ctx2d, suffix2d)


if __name__ == "__main__":
    # Small, deterministic synthetic setup consistent with the module:
    #   n_ctx context tokens, ctx_dim embedding width, tokenized length seq.
    n_prompts = 8
    n_ctx = 4
    ctx_dim = 128          # CLIP ln_final width (512) scaled down; lane-aligned
    seq = 8                # tokenized prompt length (CLIP uses 77)
    prefix_len = 1
    suffix_len = seq - prefix_len - n_ctx
    dtype = jnp.float32

    key = jax.random.PRNGKey(0)
    k_ctx, k_emb = jax.random.split(key)

    # ctx ~ Normal(0, 0.02)  (matches nn.init.normal_(ctx_vectors, std=0.02))
    ctx = (0.02 * jax.random.normal(k_ctx, (n_ctx, ctx_dim))).astype(dtype)

    # Synthetic stand-in for the frozen CLIP token_embedding of the tokenized
    # prompt, shape (1, seq, ctx_dim).
    # TODO(synk): real CLIP tokenizer / token_embedding not reproducible here;
    # buffers are deterministic random stand-ins with the correct shapes.
    embedding = jax.random.normal(k_emb, (1, seq, ctx_dim)).astype(dtype)
    token_prefix = embedding[:, :prefix_len, :]              # (1, 1, ctx_dim)
    token_suffix = embedding[:, prefix_len + n_ctx:, :]      # (1, suffix_len, ctx_dim)

    prompts = prompt_learner_forward(token_prefix, ctx, token_suffix, n_prompts)
    prompts = jax.block_until_ready(prompts)

    # Pure-JAX reference: broadcast + concat, identical semantics.
    ref = jnp.concatenate(
        [
            jnp.broadcast_to(token_prefix, (n_prompts, prefix_len, ctx_dim)),
            jnp.broadcast_to(ctx[None], (n_prompts, n_ctx, ctx_dim)),
            jnp.broadcast_to(token_suffix, (n_prompts, suffix_len, ctx_dim)),
        ],
        axis=1,
    )
    assert prompts.shape == (n_prompts, seq, ctx_dim)
    assert jnp.allclose(prompts, ref), "Pallas output mismatch vs reference"

    print("KERNEL_OK")
</pallas_src>

<mosaic_0001>
module attributes {stable_mosaic.version = 11 : i64} {
  func.func @kernel(%arg0: i32, %arg1: memref<1x128xf32, #tpu.memory_space<vmem>>, %arg2: memref<4x128xf32, #tpu.memory_space<vmem>>, %arg3: memref<3x128xf32, #tpu.memory_space<vmem>>, %arg4: memref<8x8x128xf32, #tpu.memory_space<any>>, %arg5: memref<8x128xf32, #tpu.memory_space<vmem>>, %arg6: memref<4x!tpu.dma_semaphore, #tpu.memory_space<semaphore_mem>>) attributes {dimension_semantics = [#tpu.dimension_semantics<parallel>], iteration_bounds = array<i64: 2>, scalar_prefetch = 0 : i64, scratch_operands = 2 : i64, tpu.core_type = #tpu.core_type<tc>, window_params = [{pipeline_mode = #tpu.pipeline_mode<synchronous>, transform_indices = @transform_0, window_bounds = array<i64: 1, 128>}, {pipeline_mode = #tpu.pipeline_mode<synchronous>, transform_indices = @transform_1, window_bounds = array<i64: 4, 128>}, {pipeline_mode = #tpu.pipeline_mode<synchronous>, transform_indices = @transform_2, window_bounds = array<i64: 3, 128>}, {}]} {
    %c0 = arith.constant 0 : index
    %c0_0 = arith.constant 0 : index
    %0 = vector.load %arg1[%c0, %c0_0] : memref<1x128xf32, #tpu.memory_space<vmem>>, vector<1x128xf32>
    %c0_1 = arith.constant 0 : index
    %c0_2 = arith.constant 0 : index
    %1 = vector.load %arg5[%c0_1, %c0_2] : memref<8x128xf32, #tpu.memory_space<vmem>>, vector<1x128xf32>
    tpu.vector_store %arg5[%c0_1, %c0_2], %0 {strides = array<i32>} : memref<8x128xf32, #tpu.memory_space<vmem>>, vector<1x128xf32>,
    %c0_3 = arith.constant 0 : index
    %c0_4 = arith.constant 0 : index
    %2 = vector.load %arg2[%c0_3, %c0_4] : memref<4x128xf32, #tpu.memory_space<vmem>>, vector<4x128xf32>
    %c1 = arith.constant 1 : index
    %c0_5 = arith.constant 0 : index
    %3 = vector.load %arg5[%c1, %c0_5] : memref<8x128xf32, #tpu.memory_space<vmem>>, vector<4x128xf32>
    tpu.vector_store %arg5[%c1, %c0_5], %2 {strides = array<i32>} : memref<8x128xf32, #tpu.memory_space<vmem>>, vector<4x128xf32>,
    %c0_6 = arith.constant 0 : index
    %c0_7 = arith.constant 0 : index
    %4 = vector.load %arg3[%c0_6, %c0_7] : memref<3x128xf32, #tpu.memory_space<vmem>>, vector<3x128xf32>
    %c5 = arith.constant 5 : index
    %c0_8 = arith.constant 0 : index
    %5 = vector.load %arg5[%c5, %c0_8] : memref<8x128xf32, #tpu.memory_space<vmem>>, vector<3x128xf32>
    tpu.vector_store %arg5[%c5, %c0_8], %4 {strides = array<i32>} : memref<8x128xf32, #tpu.memory_space<vmem>>, vector<3x128xf32>,
    %c4_i32 = arith.constant 4 : i32
    %6 = arith.muli %arg0, %c4_i32 : i32
    %c8_i32 = arith.constant 8 : i32
    %7 = arith.subi %c8_i32, %6 : i32
    %c4_i32_9 = arith.constant 4 : i32
    %8 = arith.minsi %c4_i32_9, %7 : i32
    %c0_i32 = arith.constant 0 : i32
    %9 = arith.subi %8, %c0_i32 : i32
    %c1_i32 = arith.constant 1 : i32
    %c1_i32_10 = arith.constant 1 : i32
    %10 = arith.subi %c1_i32, %c1_i32_10 : i32
    %11 = arith.addi %9, %10 : i32
    %c1_i32_11 = arith.constant 1 : i32
    %12 = arith.divsi %11, %c1_i32_11 : i32
    %c1_i32_12 = arith.constant 1 : i32
    %c0_i32_13 = arith.constant 0 : i32
    %c0_i32_14 = arith.constant 0 : i32
    %13 = arith.subi %12, %c0_i32_14 : i32
    %14 = arith.addi %c0_i32_14, %13 : i32
    %c1_i32_15 = arith.constant 1 : i32
    scf.for %arg7 = %c0_i32_14 to %14 step %c1_i32_15  : i32 {
      %22 = arith.muli %arg7, %c1_i32_12 : i32
      %23 = arith.addi %c0_i32_13, %22 : i32
      %c4_i32_25 = arith.constant 4 : i32
      %c0_i32_26 = arith.constant 0 : i32
      %24 = arith.cmpi eq, %c4_i32_25, %c0_i32_26 : i32
      %c1_i32_27 = arith.constant 1 : i32
      %25 = arith.select %24, %c1_i32_27, %c4_i32_25 : i32
      %26 = arith.remsi %23, %25 : i32
      %c0_i32_28 = arith.constant 0 : i32
      %27 = arith.cmpi ne, %26, %c0_i32_28 : i32
      %c0_i32_29 = arith.constant 0 : i32
      %28 = arith.cmpi slt, %26, %c0_i32_29 : i32
      %c0_i32_30 = arith.constant 0 : i32
      %29 = arith.cmpi slt, %25, %c0_i32_30 : i32
      %30 = arith.xori %28, %29 : i1
      %31 = arith.andi %30, %27 : i1
      %32 = arith.addi %26, %25 : i32
      %33 = arith.select %31, %32, %26 : i32
      %c4_i32_31 = arith.constant 4 : i32
      %34 = arith.cmpi sge, %23, %c4_i32_31 : i32
      %35 = arith.extui %34 : i1 to i32
      %c0_i32_32 = arith.constant 0 : i32
      %36 = arith.cmpi ne, %35, %c0_i32_32 : i32
      scf.if %36 {
        %c0_i32_35 = arith.constant 0 : i32
        %c0_i32_36 = arith.constant 0 : i32
        %c0_i32_37 = arith.constant 0 : i32
        %42 = tpu.memref_slice %arg4[%c0_i32_35, %c0_i32_36, %c0_i32_37] : memref<8x8x128xf32, #tpu.memory_space<any>> -> memref<1x8x128xf32, #tpu.memory_space<any>>
        %43 = tpu.memref_squeeze %42 : memref<1x8x128xf32, #tpu.memory_space<any>> -> memref<8x128xf32, #tpu.memory_space<any>>
        %44 = tpu.memref_slice %arg6[%33] : memref<4x!tpu.dma_semaphore, #tpu.memory_space<semaphore_mem>> -> memref<1x!tpu.dma_semaphore, #tpu.memory_space<semaphore_mem>>
        %45 = tpu.memref_squeeze %44 : memref<1x!tpu.dma_semaphore, #tpu.memory_space<semaphore_mem>> -> memref<!tpu.dma_semaphore, #tpu.memory_space<semaphore_mem>>
        tpu.wait_dma2 semaphore(%45 : memref<!tpu.dma_semaphore, #tpu.memory_space<semaphore_mem>>) src(%arg5 : memref<8x128xf32, #tpu.memory_space<vmem>>) dst(%43 : memref<8x128xf32, #tpu.memory_space<any>>)
      } else {
      }
      %37 = arith.addi %6, %23 : i32
      %c0_i32_33 = arith.constant 0 : i32
      %c0_i32_34 = arith.constant 0 : i32
      %38 = tpu.memref_slice %arg4[%37, %c0_i32_33, %c0_i32_34] : memref<8x8x128xf32, #tpu.memory_space<any>> -> memref<1x8x128xf32, #tpu.memory_space<any>>
      %39 = tpu.memref_squeeze %38 : memref<1x8x128xf32, #tpu.memory_space<any>> -> memref<8x128xf32, #tpu.memory_space<any>>
      %40 = tpu.memref_slice %arg6[%33] : memref<4x!tpu.dma_semaphore, #tpu.memory_space<semaphore_mem>> -> memref<1x!tpu.dma_semaphore, #tpu.memory_space<semaphore_mem>>
      %41 = tpu.memref_squeeze %40 : memref<1x!tpu.dma_semaphore, #tpu.memory_space<semaphore_mem>> -> memref<!tpu.dma_semaphore, #tpu.memory_space<semaphore_mem>>
      tpu.enqueue_dma source(%arg5 : memref<8x128xf32, #tpu.memory_space<vmem>>) target(%39 : memref<8x128xf32, #tpu.memory_space<any>>) target_semaphore(%41 : memref<!tpu.dma_semaphore, #tpu.memory_space<semaphore_mem>>)
    }
    %c4_i32_16 = arith.constant 4 : i32
    %15 = arith.minsi %8, %c4_i32_16 : i32
    %c0_i32_17 = arith.constant 0 : i32
    %16 = arith.subi %15, %c0_i32_17 : i32
    %c1_i32_18 = arith.constant 1 : i32
    %c1_i32_19 = arith.constant 1 : i32
    %17 = arith.subi %c1_i32_18, %c1_i32_19 : i32
    %18 = arith.addi %16, %17 : i32
    %c1_i32_20 = arith.constant 1 : i32
    %19 = arith.divsi %18, %c1_i32_20 : i32
    %c1_i32_21 = arith.constant 1 : i32
    %c0_i32_22 = arith.constant 0 : i32
    %c0_i32_23 = arith.constant 0 : i32
    %20 = arith.subi %19, %c0_i32_23 : i32
    %21 = arith.addi %c0_i32_23, %20 : i32
    %c1_i32_24 = arith.constant 1 : i32
    scf.for %arg7 = %c0_i32_23 to %21 step %c1_i32_24  : i32 {
      %22 = arith.muli %arg7, %c1_i32_21 : i32
      %23 = arith.addi %c0_i32_22, %22 : i32
      %c0_i32_25 = arith.constant 0 : i32
      %c0_i32_26 = arith.constant 0 : i32
      %c0_i32_27 = arith.constant 0 : i32
      %24 = tpu.memref_slice %arg4[%c0_i32_25, %c0_i32_26, %c0_i32_27] : memref<8x8x128xf32, #tpu.memory_space<any>> -> memref<1x8x128xf32, #tpu.memory_space<any>>
      %25 = tpu.memref_squeeze %24 : memref<1x8x128xf32, #tpu.memory_space<any>> -> memref<8x128xf32, #tpu.memory_space<any>>
      %26 = tpu.memref_slice %arg6[%23] : memref<4x!tpu.dma_semaphore, #tpu.memory_space<semaphore_mem>> -> memref<1x!tpu.dma_semaphore, #tpu.memory_space<semaphore_mem>>
      %27 = tpu.memref_squeeze %26 : memref<1x!tpu.dma_semaphore, #tpu.memory_space<semaphore_mem>> -> memref<!tpu.dma_semaphore, #tpu.memory_space<semaphore_mem>>
      tpu.wait_dma2 semaphore(%27 : memref<!tpu.dma_semaphore, #tpu.memory_space<semaphore_mem>>) src(%arg5 : memref<8x128xf32, #tpu.memory_space<vmem>>) dst(%25 : memref<8x128xf32, #tpu.memory_space<any>>)
    }
    return
  }
  func.func @transform_0(%arg0: i32) -> (i32, i32) {
    %c0_i32 = arith.constant 0 : i32
    %c0_i32_0 = arith.constant 0 : i32
    %c0_i32_1 = arith.constant 0 : i32
    return %c0_i32, %c0_i32_0 : i32, i32
  }
  func.func @transform_1(%arg0: i32) -> (i32, i32) {
    %c0_i32 = arith.constant 0 : i32
    %c0_i32_0 = arith.constant 0 : i32
    %c0_i32_1 = arith.constant 0 : i32
    return %c0_i32, %c0_i32_0 : i32, i32
  }
  func.func @transform_2(%arg0: i32) -> (i32, i32) {
    %c0_i32 = arith.constant 0 : i32
    %c0_i32_0 = arith.constant 0 : i32
    %c0_i32_1 = arith.constant 0 : i32
    return %c0_i32, %c0_i32_0 : i32, i32
  }
}

</mosaic_0001>

<bundles_post_ra>
// kernel: tpu_custom_call.1
= control target key start
LH: loop header
LB: loop body
LE: loop exit
PB: predicated region body
PF: predicated region fallthrough
CT: control target
= control target key end

     0   :  { %8 = vsyncpa [#allocation5], 0  ;;  %s629_s0 = inlined_call_operand.hbm [shape: f32[1,128], index: 0, kind: input, shape index: {}]   ;;  %s630_s1 = inlined_call_operand.hbm [shape: f32[4,128], index: 1, kind: input, shape index: {}]   ;;  %s631_s2 = inlined_call_operand.hbm [shape: f32[3,128], index: 2, kind: input, shape index: {}]   ;;  %s632_s3 = inlined_call_operand.hbm [shape: f32[8,8,128], index: 3, kind: output, shape index: {}]  }
   0x1   :  { %9 = vsyncpa [#allocation7], 0  ;;  %s522_s12 = smov 0  }
   0x2 LB: > { %s498_s13 = smov [#allocation6]   ;;  %s269_s15 = sadd.s32 4294967295, %s488_s12   ;;  %s488_s12 = sphi %s522_s12, %s15_s12  }
   0x3   : > { %s83_s14 = sshll.u32 %s498_s13, 4  ;;  %p324_p1 = scmp.ge.s32.totalorder %s488_s12, 1  ;;  %s84_s14 = int_to_ptr.vmem [resolvable:$true] %s83_s14 }
   0x4   : > { %p532_p2 = scmp.eq.s32.totalorder %s269_s15, 0  ;;  %s499_s18 = smov [#allocation4]  }
   0x5   : > { %s72_s19 = sshll.u32 %s499_s18, 4  ;;  %s500_s20 = smov [#allocation8]   ;;  %s73_s19 = int_to_ptr.vmem [resolvable:$true] %s72_s19 }
   0x6   : > { %p538_p3 = pnand %p532_p2, %p324_p1  ;;  %s94_s21 = sshll.u32 %s500_s20, 4  ;;  %s542_s21 = int_to_ptr.vmem [resolvable:$true] %s94_s21 }
   0x7   : > { %s371_s22 = scalar_lea.vmem %s84_s14, 64  ;;  %p379_p8 = scmp.lt.s32.totalorder %s84_s14, %s84_s14 }
   0x8   : > { %p362_p4 = pneg %p538_p3  ;;  %p372_p5 = scmp.ne.s32.totalorder %s84_s14, %s371_s22 }
   0x9   : > { %p380_p9 = scmp.lt.s32.totalorder %s371_s22, %s371_s22 }
   0xa   : > { %p374_p6 = pnand %p372_p5, %p362_p4 }
   0xb   : > { %p381_p10 = por %p380_p9, %p379_p8 }
   0xc   : > { %p375_p7 = pneg %p374_p6 }
   0xe   : > { %p382_p11 = pnand %p381_p10, %p375_p7 }
  0x10   : > { %385 = shalt.err (!%p382_p11)
}
  0x11   : > { %320 = dma.hbm_to_vmem [thread:$0]  (!%p538_p3), %s630_s1, 64, %s84_s14, [#allocation7]  }
  0x12   : > { %s397_s25 = scalar_lea.vmem %s73_s19, 16  ;;  %s404_s26 = scalar_lea.vmem %s73_s19, 32 }
  0x13   : > { %p398_p12 = scmp.ne.s32.totalorder %s73_s19, %s397_s25  ;;  %p405_p5 = scmp.lt.s32.totalorder %s73_s19, %s73_s19 }
  0x14   : > { %p406_p6 = scmp.lt.s32.totalorder %s404_s26, %s397_s25 }
  0x15   : > { %p400_p13 = pnand %p398_p12, %p362_p4 }
  0x16   : > { %p407_p0 = por %p406_p6, %p405_p5 }
  0x17   : > { %p401_p1 = pneg %p400_p13 }
  0x19   : > { %p408_p8 = pnand %p407_p0, %p401_p1 }
  0x1b   : > { %411 = shalt.err (!%p408_p8)
}
  0x1c   : > { %317 = dma.hbm_to_vmem [thread:$0]  (!%p538_p3), %s629_s0, 16, %s73_s19, [#allocation5]  }
  0x1d   : > { %s423_s29 = scalar_lea.vmem %s542_s21, 64  ;;  %p431_p11 = scmp.lt.s32.totalorder %s542_s21, %s542_s21 }
  0x1e   : > { %p424_p7 = scmp.ne.s32.totalorder %s542_s21, %s423_s29  ;;  %p432_p0 = scmp.lt.s32.totalorder %s423_s29, %s423_s29 }
  0x20   : > { %p426_p9 = pnand %p424_p7, %p362_p4  ;;  %p433_p12 = por %p432_p0, %p431_p11 }
  0x22   : > { %p427_p10 = pneg %p426_p9 }
  0x24   : > { %p434_p13 = pnand %p433_p12, %p427_p10 }
  0x26   : > { %437 = shalt.err (!%p434_p13)
}
  0x27   : > { %323 = dma.hbm_to_vmem [thread:$0]  (!%p538_p3), %s631_s2, 64, %s542_s21, [#allocation7]  }
  0x28   : > { %p635_p1 = scmp.lt.s32.totalorder %s488_s12, 1 }
  0x2a   : > { %105 = sbr.rel (%p635_p1) target bundleno = 117 (0x75), region = 32 }
  0x2f   : > { %473 = dma.done.wait (%p532_p2), [#allocation5], 16  }
  0x30   : > { %475 = vsyncadd (%p532_p2), [#allocation5], 4294967280 }
  0x31   : > { %477 = dma.done.wait (%p532_p2), [#allocation7], 128  }
  0x32   : > { %479 = vsyncadd (%p532_p2), [#allocation7], 4294967168  ;;  %s587_s5 = sshll.u32 %s269_s15, 2  ;;  %v125_v0 = vld [vmem:[#allocation4] sm:$0x1] }
  0x33   : > { %s590_s6 = ssub.s32 8, %s587_s5  ;;  %v127_v1 = vld [vmem:[#allocation6] sm:$0xf]  ;;  %v129_v2 = vld [vmem:[#allocation8] sm:$0x7] }
  0x34   : > { %p133_p3 = scmp.lt.s32.totalorder %s590_s6, 4  ;;  %126 = vst [vmem:[#allocation2] sm:$0x1] %v125_v0  ;;  %128 = vst [vmem:[#allocation2 + $0x1] sm:$0xf] %v127_v1  ;;  %p296_p2 = scmp.le.s32.totalorder %s590_s6, 0 }
  0x35   : > { %130 = vst [vmem:[#allocation2 + $0x5] sm:$0x7] %v129_v2  ;;  %s599_s8 = smov (!%p296_p2), 0  }
  0x36   : > { %s596_s7 = scalar_select %p133_p3, %s590_s6, 4 }
  0x37   : > { %229 = sbr.rel (%p296_p2) target bundleno = 99 (0x63), region = 79 }
  0x3c LB: >> { %p141_p4 = scmp.lt.s32.totalorder %s492_s8, 0  ;;  %s142_s9 = ssub.s32 0, %s492_s8  ;;  %s492_s8 = sphi %s599_s8, %s138_s8  }
  0x3d   : >> { %s282_s10 = smin.u32 %s492_s8, %s142_s9  ;;  %p331_p5 = scmp.ge.s32.totalorder %s492_s8, 4 }
  0x3e   : >> { %s144_s11 = sand.u32 3, %s282_s10  }
  0x3f   : >> { %s145_s13 = ssub.s32 0, %s144_s11 }
  0x40   : >> { %s637_s13 = smov (!%p141_p4, %s145_s13), %s144_s11 }
  0x41   : >> { %p284_p6 = scmp.lt.s32.totalorder %s637_s13, 0  ;;  %s151_s14 = sadd.s32 4, %s637_s13 }
  0x43   : >> { %s639_s14 = smov (!%p284_p6, %s151_s14), %s637_s13 }
  0x44   : >> { %s157_s15 = scalar_lea.sflag [#allocation3], %s639_s14 }
  0x45   : >> { %481 = dma.done.wait (%p331_p5), %s157_s15, 128 }
  0x46   : >> { %483 = vsyncadd (%p331_p5), %s157_s15, 4294967168  ;;  %s161_s16 = sadd.s32 %s492_s8, %s587_s5  ;;  %s501_s18 = smov [#allocation2]  }
  0x47   : >> { %s299_s17 = sshll.u32 %s161_s16, 7  ;;  %s173_s19 = sshll.u32 %s501_s18, 4  ;;  %s174_s19 = int_to_ptr.vmem [resolvable:$true] %s173_s19 }
  0x48   : >> { %s164_s22 = scalar_lea.hbm %s632_s3, %s299_s17  ;;  %s438_s23 = scalar_lea.vmem %s174_s19, 128 }
  0x49   : >> { %p439_p8 = scmp.ne.s32.totalorder %s174_s19, %s438_s23  ;;  %p443_p7 = scmp.lt.s32.totalorder %s174_s19, %s174_s19 }
  0x4a   : >> { %p444_p9 = scmp.lt.s32.totalorder %s438_s23, %s438_s23 }
  0x4c   : >> { %p445_p10 = por %p444_p9, %p443_p7 }
  0x4e   : >> { %p446_p11 = pnand %p445_p10, %p439_p8 }
  0x50   : >> { %449 = shalt.err (!%p446_p11)  }
  0x51   : >> { %s450_s24 = scalar_lea.hbm %s164_s22, 128  ;;  %s452_s27 = scalar_lea.hbm %s632_s3, 1024 }
  0x52   : >> { %p451_p0 = scmp.ne.s32.totalorder %s164_s22, %s450_s24  ;;  %p453_p12 = scmp.lt.s32.totalorder %s164_s22, %s632_s3 }
  0x53   : >> { %p454_p13 = scmp.lt.s32.totalorder %s452_s27, %s450_s24 }
  0x55   : >> { %p455_p1 = por %p454_p13, %p453_p12 }
  0x57   : >> { %p456_p2 = pnand %p455_p1, %p451_p0 }
  0x59   : >> { %459 = shalt.err (!%p456_p2)  }
  0x5a   : >> { %176 = dma.vmem_to_hbm [thread:$0]  %s174_s19, 128, %s164_s22, %s157_s15 }
  0x5b   : >> { %s138_s8 = sadd.s32 1, %s492_s8  }
  0x5c   : >> { %p137_p4 = scmp.ge.s32.totalorder %s138_s8, %s596_s7 }
  0x5e   : > { %140 = sbr.rel (!%p137_p4) target bundleno = 60 (0x3c), region = 85 }
  0x63 PF: > { %s641_s7 = smov (!%p133_p3, %s596_s7), 4 }
  0x64   : > { %p291_p5 = scmp.le.s32.totalorder %s641_s7, 0 }
  0x65   : > { %s494_s30 = smov (!%p291_p5), 0  }
  0x66   : > { %234 = sbr.rel (%p291_p5) target bundleno = 117 (0x75), region = 90 }
  0x6b LB: >> { %s185_s4 = scalar_lea.sflag [#allocation3], %s496_s30  ;;  %s496_s30 = sphi %s494_s30, %s182_s30  }
  0x6c   : >> { %484 = dma.done.wait %s185_s4, 128 }
  0x6d   : >> { %485 = vsyncadd %s185_s4, 4294967168  ;;  %s182_s30 = sadd.s32 1, %s496_s30  }
  0x6e   : >> { %p181_p6 = scmp.ge.s32.totalorder %s182_s30, %s641_s7 }
  0x70   : > { %184 = sbr.rel (!%p181_p6) target bundleno = 107 (0x6b), region = 96 }
  0x75 PF: > { %s15_s12 = sadd.s32 1, %s488_s12  }
  0x76   : > { %p12_p8 = scmp.ge.s32.totalorder %s15_s12, 3  }
  0x78   :  { %14 = sbr.rel (!%p12_p8) target bundleno = 2 (0x2), region = 107 }
  0x7d   :  { %189 = vsyncpa [#allocation5], 1 }
  0x7e   :  { %191 = vsyncpa [#allocation5 + $0x1], 1 }
  0x7f   :  { %192 = vsyncpa [#allocation7], 1 }
  0x80   :  { %193 = vsyncmov [#allocation3] }
  0x83   :  { %s194_s5 = vpop.sfrf %193 }
  0x84   :  { %p292_p3 = scmp.ne.s32.totalorder %s194_s5, 0 }
  0x86   :  { %198 = shalt.err (%p292_p3)  }
  0x87   :  { %200 = vsyncmov [#allocation3 + $0x1] }
  0x8a   :  { %s201_s6 = vpop.sfrf %200 }
  0x8b   :  { %p293_p7 = scmp.ne.s32.totalorder %s201_s6, 0 }
  0x8d   :  { %205 = shalt.err (%p293_p7)  }
  0x8e   :  { %207 = vsyncmov [#allocation3 + $0x2] }
  0x91   :  { %s208_s7 = vpop.sfrf %207 }
  0x92   :  { %p294_p9 = scmp.ne.s32.totalorder %s208_s7, 0 }
  0x94   :  { %212 = shalt.err (%p294_p9)  }
  0x95   :  { %214 = vsyncmov [#allocation3 + $0x3] }
  0x98   :  { %s215_s8 = vpop.sfrf %214 }
  0x99   :  { %p295_p10 = scmp.ne.s32.totalorder %s215_s8, 0 }
  0x9b   :  { %219 = shalt.err (%p295_p10)  }

</bundles_post_ra>
